<compile_context>
chip_gen: v6e
topology: v6e:2x2x1
jax: 0.10.0
libtpu: 0.0.40
codegen_flags: <defaults>
</compile_context>

<pallas_src>
import numpy as np
import jax
import jax.numpy as jnp
from jax.experimental import pallas as pl
from jax.experimental.pallas import tpu as pltpu


# ---------------------------------------------------------------------------
# Tiling helpers
# ---------------------------------------------------------------------------

_LANE = 128                       # TPU vreg lane width
_MAX_LANE_TILE = 2048             # lane tile cap (multiple of 128)
_TILE_BYTES = 2 * 1024 * 1024     # per-operand tile budget (~2 MiB)
_MIN_PALLAS_BYTES = 64 * 1024     # below this, plain XLA is cheaper (fusable)
_VMEM_LIMIT = 32 * 1024 * 1024    # safe on v5e/v6e/v7x for our tile sizes


def _sublane_multiple(dtype):
    # 8 for f32, 16 for bf16, 32 for int8 (packed vreg sublane layout).
    return max(8, 32 // jnp.dtype(dtype).itemsize)


def _pick_lane_tile(n):
    # Last-dim tile: full extent if small enough, else a multiple of 128.
    return n if n <= _MAX_LANE_TILE else _MAX_LANE_TILE


def _pick_sublane_tile(c, lane_tile, dtype):
    sub = _sublane_multiple(dtype)
    itemsize = jnp.dtype(dtype).itemsize
    max_rows = max(sub, _TILE_BYTES // max(1, lane_tile * itemsize))
    tc = min(c, max_rows)
    if tc >= c:
        return c                       # full extent (always legal)
    return max(sub, (tc // sub) * sub)  # tiled: multiple of the packing factor


def _flatten_lane_dense(x):
    """Flatten to 2D with a lane-dense (>=128, multiple-of-128) last dim if possible."""
    total = int(x.size)
    for lane in (4096, 2048, 1024, 512, 256, 128):
        if total % lane == 0 and total // lane >= 1:
            return x.reshape(total // lane, lane)
    if x.ndim >= 2:
        return x.reshape(-1, x.shape[-1])
    return x.reshape(1, -1)


def _compiler_params(n_axes):
    return pltpu.CompilerParams(
        dimension_semantics=("parallel",) * n_axes,
        vmem_limit_bytes=_VMEM_LIMIT)


# ---------------------------------------------------------------------------
# Pallas kernels
# ---------------------------------------------------------------------------

def _channel_mask_kernel(mask_ref, x_ref, o_ref):
    # mask_ref: (tc, 1) broadcasts across lanes; x_ref / o_ref: (tc, tr)
    o_ref[...] = x_ref[...] * mask_ref[...]


def _channel_mask_3d_kernel(mask_ref, x_ref, o_ref):
    # mask_ref: (bc, 1); x_ref / o_ref: (bp, bc, bq); broadcast in-kernel,
    # so no wrapper-side transpose of X is needed for pruning_dim != 0.
    o_ref[...] = x_ref[...] * mask_ref[...][None, :, :]


def _elementwise_mask_kernel(mask_ref, x_ref, o_ref):
    o_ref[...] = x_ref[...] * mask_ref[...]


# ---------------------------------------------------------------------------
# Pallas wrappers
# ---------------------------------------------------------------------------

def _apply_channel_mask_2d(x2d, mask1d):
    """out[c, r] = x2d[c, r] * mask1d[c]  (mask broadcast along lanes)."""
    C, R = x2d.shape
    dtype = x2d.dtype
    itemsize = jnp.dtype(dtype).itemsize
    mask2d = mask1d.astype(dtype).reshape(C, 1)

    tr = _pick_lane_tile(R)
    tc = _pick_sublane_tile(C, tr, dtype)
    grid = (pl.cdiv(C, tc), pl.cdiv(R, tr))
    cost = pl.CostEstimate(flops=C * R, transcendentals=0,
                           bytes_accessed=(2 * C * R + C) * itemsize)
    return pl.pallas_call(
        _channel_mask_kernel,
        out_shape=jax.ShapeDtypeStruct((C, R), dtype),
        grid=grid,
        in_specs=[pl.BlockSpec((tc, 1), lambda i, j: (i, 0)),
                  pl.BlockSpec((tc, tr), lambda i, j: (i, j))],
        out_specs=pl.BlockSpec((tc, tr), lambda i, j: (i, j)),
        compiler_params=_compiler_params(2),
        cost_estimate=cost,
    )(mask2d, x2d)


def _apply_channel_mask_3d(x3d, mask1d):
    """out[p, c, q] = x3d[p, c, q] * mask1d[c]  (pruning_dim != 0, no transpose)."""
    P, C, Q = x3d.shape
    dtype = x3d.dtype
    itemsize = jnp.dtype(dtype).itemsize
    mask2d = mask1d.astype(dtype).reshape(C, 1)

    bq = _pick_lane_tile(Q)
    bc = _pick_sublane_tile(C, bq, dtype)
    bp = max(1, min(P, _TILE_BYTES // max(1, bc * bq * itemsize)))
    grid = (pl.cdiv(P, bp), pl.cdiv(C, bc), pl.cdiv(Q, bq))
    cost = pl.CostEstimate(flops=P * C * Q, transcendentals=0,
                           bytes_accessed=(2 * P * C * Q + C) * itemsize)
    return pl.pallas_call(
        _channel_mask_3d_kernel,
        out_shape=jax.ShapeDtypeStruct((P, C, Q), dtype),
        grid=grid,
        in_specs=[pl.BlockSpec((bc, 1), lambda p, c, q: (c, 0)),
                  pl.BlockSpec((bp, bc, bq), lambda p, c, q: (p, c, q))],
        out_specs=pl.BlockSpec((bp, bc, bq), lambda p, c, q: (p, c, q)),
        compiler_params=_compiler_params(3),
        cost_estimate=cost,
    )(mask2d, x3d)


def _apply_elementwise_mask(x, mask):
    """out = x * mask, mask same shape as x (any rank). Lane-dense flattening."""
    orig_shape = x.shape
    dtype = x.dtype
    itemsize = jnp.dtype(dtype).itemsize
    x2d = _flatten_lane_dense(x)
    m2d = _flatten_lane_dense(mask.astype(dtype).reshape(orig_shape))
    M, N = x2d.shape

    tn = _pick_lane_tile(N)
    tm = _pick_sublane_tile(M, tn, dtype)
    grid = (pl.cdiv(M, tm), pl.cdiv(N, tn))
    cost = pl.CostEstimate(flops=M * N, transcendentals=0,
                           bytes_accessed=3 * M * N * itemsize)
    out = pl.pallas_call(
        _elementwise_mask_kernel,
        out_shape=jax.ShapeDtypeStruct((M, N), dtype),
        grid=grid,
        in_specs=[pl.BlockSpec((tm, tn), lambda i, j: (i, j)),
                  pl.BlockSpec((tm, tn), lambda i, j: (i, j))],
        out_specs=pl.BlockSpec((tm, tn), lambda i, j: (i, j)),
        compiler_params=_compiler_params(2),
        cost_estimate=cost,
    )(m2d, x2d)
    return out.reshape(orig_shape)


# ---------------------------------------------------------------------------
# Module port (parameter / mask setup in plain JAX; multiply in Pallas)
# ---------------------------------------------------------------------------

class SoftPruningParametrization:
    """JAX port of the PyTorch SoftPruningParametrization forward pass."""

    def __init__(self, net_weight, source_is_conv2d=True, channel_pruning=False,
                 pruning_ratio=0.6, n2m_pruning=False, init_train_ep=5,
                 binary_mask=False, tao=1e-4, pruning_dim=0, **kwargs):
        self.channel_pruning = channel_pruning
        self.tao = tao
        self.binary_mask = binary_mask
        self.n2m_pruning = n2m_pruning
        self.pruning_ratio = pruning_ratio
        self.init_train_ep = init_train_ep
        self.fpgm_weights = True
        self.pruning_dim = pruning_dim
        for k in ("epoch_count", "total_epochs", "prunechannelunstructured", "m"):
            if k in kwargs:
                setattr(self, k, kwargs[k])

        self.new_shape = list(range(net_weight.ndim))
        self.new_shape[0], self.new_shape[pruning_dim] = (
            self.new_shape[pruning_dim], self.new_shape[0])

        # TODO(synk): is_depthwise() in PyTorch walks the torch.fx graph / source
        # partition; here its decision is reproduced directly from the weight shape
        # (Conv2d depthwise <=> in_channels dim == 1).
        depthwise = bool(source_is_conv2d and net_weight.ndim == 4
                         and net_weight.shape[1] == 1)

        nelem = int(np.prod(net_weight.shape))
        c = net_weight.shape[pruning_dim]
        if int(self.pruning_ratio * nelem) == 0 or depthwise:
            if channel_pruning:
                mask = jnp.ones((c,), net_weight.dtype)
            else:
                mask = jnp.ones_like(net_weight)
        elif c <= 32 and channel_pruning:
            mask = jnp.ones((c,), net_weight.dtype)
        else:
            mask = self.create_mask(net_weight)

        if self.binary_mask:
            self.mask = mask >= 0.5
        else:
            self.mask = mask

    # Base-class create_mask: subclasses override this with sigmoid/FPGM masks.
    def create_mask(self, net_weight):
        return jnp.ones_like(net_weight)

    def right_inverse(self, A):
        return A

    def __call__(self, X):
        return self.forward(X)

    # --- dispatch helpers -------------------------------------------------

    @staticmethod
    def _mul_elementwise(X, mask, nbytes):
        if nbytes >= _MIN_PALLAS_BYTES and _flatten_lane_dense(X).shape[-1] >= _LANE:
            return _apply_elementwise_mask(X, mask)
        # tiny / lane-hostile tensors: plain XLA (fuses with neighboring ops)
        return X * mask.astype(X.dtype).reshape(X.shape)

    def forward(self, X):
        mask = self.mask
        nbytes = int(X.size) * jnp.dtype(X.dtype).itemsize

        if self.channel_pruning:
            if X.ndim == 1:
                return self._mul_elementwise(X, mask, nbytes)
            if mask.ndim == X.ndim:
                # TODO(synk): PyTorch's pruning_dim!=0 branch with a full-shape mask
                # permutes X before the multiply; real subclasses never hit it, so a
                # plain elementwise multiply is used here.
                return self._mul_elementwise(X, mask, nbytes)

            if self.pruning_dim == 0:
                C = X.shape[0]
                R = int(X.size) // C
                if nbytes >= _MIN_PALLAS_BYTES and R >= _LANE:
                    out = _apply_channel_mask_2d(X.reshape(C, R), mask)
                    return out.reshape(X.shape)
                bshape = (C,) + (1,) * (X.ndim - 1)
                return X * mask.astype(X.dtype).reshape(bshape)
            else:
                pd = self.pruning_dim
                P = int(np.prod(X.shape[:pd]))
                C = X.shape[pd]
                Q = int(np.prod(X.shape[pd + 1:]))
                if nbytes >= _MIN_PALLAS_BYTES and Q >= _LANE:
                    out = _apply_channel_mask_3d(X.reshape(P, C, Q), mask)
                    return out.reshape(X.shape)
                bshape = [1] * X.ndim
                bshape[pd] = C
                return X * mask.astype(X.dtype).reshape(bshape)
        else:
            return self._mul_elementwise(X, mask, nbytes)


# ---------------------------------------------------------------------------
# Demo / correctness check
# ---------------------------------------------------------------------------

if __name__ == "__main__":
    key = jax.random.PRNGKey(0)
    k1, k2, k3, k4, k5 = jax.random.split(key, 5)

    # 1) Conv2d weight (OIHW), channel pruning over dim 0 (C=32 -> 1D ones mask).
    #    256 KiB f32, lane-dense inner dim -> tiled Pallas broadcast kernel.
    w_conv = jax.random.normal(k1, (32, 128, 4, 4), dtype=jnp.float32)
    mod_ch = SoftPruningParametrization(w_conv, source_is_conv2d=True,
                                        channel_pruning=True,
                                        pruning_ratio=0.6, pruning_dim=0)
    out_ch = jax.block_until_ready(mod_ch(w_conv))
    ref_ch = w_conv * mod_ch.mask[:, None, None, None]
    assert out_ch.shape == w_conv.shape and out_ch.dtype == w_conv.dtype
    np.testing.assert_allclose(np.asarray(out_ch), np.asarray(ref_ch),
                               rtol=1e-6, atol=1e-6)

    # 2) Linear weight, unstructured pruning -> full-shape mask, elementwise kernel.
    w_lin = jax.random.normal(k2, (256, 512), dtype=jnp.float32)
    mod_el = SoftPruningParametrization(w_lin, source_is_conv2d=False,
                                        channel_pruning=False, pruning_ratio=0.6)
    out_el = jax.block_until_ready(mod_el(w_lin))
    np.testing.assert_allclose(np.asarray(out_el),
                               np.asarray(w_lin * mod_el.mask),
                               rtol=1e-6, atol=1e-6)

    # 3) Channel pruning over dim 1 (3D-blocked kernel, no wrapper-side transpose).
    w_pd1 = jax.random.normal(k3, (8, 32, 16, 16), dtype=jnp.float32)
    mod_pd1 = SoftPruningParametrization(w_pd1, source_is_conv2d=False,
                                         channel_pruning=True, pruning_ratio=0.6,
                                         pruning_dim=1)
    out_pd1 = jax.block_until_ready(mod_pd1(w_pd1))
    np.testing.assert_allclose(np.asarray(out_pd1),
                               np.asarray(w_pd1 * mod_pd1.mask[None, :, None, None]),
                               rtol=1e-6, atol=1e-6)

    # 4) Exercise the broadcast kernels directly with a non-trivial 0/1 mask
    #    (the base class only creates ones; subclasses create real masks).
    nt_mask = (jax.random.uniform(k4, (32,)) > 0.5).astype(jnp.float32)
    x2d = w_conv.reshape(32, -1)
    out_nt2 = jax.block_until_ready(_apply_channel_mask_2d(x2d, nt_mask))
    np.testing.assert_allclose(np.asarray(out_nt2),
                               np.asarray(x2d * nt_mask[:, None]),
                               rtol=1e-6, atol=1e-6)

    x3d = w_pd1.reshape(8, 32, 256)
    out_nt3 = jax.block_until_ready(_apply_channel_mask_3d(x3d, nt_mask))
    np.testing.assert_allclose(np.asarray(out_nt3),
                               np.asarray(x3d * nt_mask[None, :, None]),
                               rtol=1e-6, atol=1e-6)

    # 5) bf16 weight (sublane packing multiple of 16 handled by the tile picker).
    w_bf = jax.random.normal(k5, (16, 128, 4, 4), dtype=jnp.bfloat16)
    mod_bf = SoftPruningParametrization(w_bf, source_is_conv2d=False,
                                        channel_pruning=True, pruning_ratio=0.6,
                                        pruning_dim=0)
    out_bf = jax.block_until_ready(mod_bf(w_bf))
    ref_bf = (w_bf * mod_bf.mask[:, None, None, None]).astype(jnp.float32)
    np.testing.assert_allclose(np.asarray(out_bf.astype(jnp.float32)),
                               np.asarray(ref_bf), rtol=1e-2, atol=1e-2)

    print("KERNEL_OK")
</pallas_src>

<mosaic_0001>
module attributes {stable_mosaic.version = 11 : i64} {
  func.func @_channel_mask_kernel(%arg0: i32, %arg1: i32, %arg2: memref<32x1xf32, #tpu.memory_space<vmem>>, %arg3: memref<32x2048xf32, #tpu.memory_space<vmem>>, %arg4: memref<32x2048xf32, #tpu.memory_space<vmem>>) attributes {dimension_semantics = [#tpu.dimension_semantics<parallel>, #tpu.dimension_semantics<parallel>], iteration_bounds = array<i64: 1, 1>, scalar_prefetch = 0 : i64, scratch_operands = 0 : i64, tpu.core_type = #tpu.core_type<tc>, window_params = [{transform_indices = @transform_0, window_bounds = array<i64: 32, 1>}, {transform_indices = @transform_1, window_bounds = array<i64: 32, 2048>}, {transform_indices = @transform_2, window_bounds = array<i64: 32, 2048>}]} {
    %c0 = arith.constant 0 : index
    %c0_0 = arith.constant 0 : index
    %0 = vector.load %arg3[%c0, %c0_0] : memref<32x2048xf32, #tpu.memory_space<vmem>>, vector<32x2048xf32>
    %c0_1 = arith.constant 0 : index
    %c0_2 = arith.constant 0 : index
    %1 = vector.load %arg2[%c0_1, %c0_2] : memref<32x1xf32, #tpu.memory_space<vmem>>, vector<32x1xf32>
    %2 = vector.broadcast %1 : vector<32x1xf32> to vector<32x2048xf32>
    %3 = arith.mulf %0, %2 : vector<32x2048xf32>
    %c0_3 = arith.constant 0 : index
    %c0_4 = arith.constant 0 : index
    %4 = vector.load %arg4[%c0_3, %c0_4] : memref<32x2048xf32, #tpu.memory_space<vmem>>, vector<32x2048xf32>
    tpu.vector_store %arg4[%c0_3, %c0_4], %3 {strides = array<i32>} : memref<32x2048xf32, #tpu.memory_space<vmem>>, vector<32x2048xf32>,
    return
  }
  func.func @transform_0(%arg0: i32, %arg1: i32) -> (i32, i32) {
    %c0_i32 = arith.constant 0 : i32
    %c0_i32_0 = arith.constant 0 : i32
    return %arg0, %c0_i32 : i32, i32
  }
  func.func @transform_1(%arg0: i32, %arg1: i32) -> (i32, i32) {
    %c0_i32 = arith.constant 0 : i32
    return %arg0, %arg1 : i32, i32
  }
  func.func @transform_2(%arg0: i32, %arg1: i32) -> (i32, i32) {
    %c0_i32 = arith.constant 0 : i32
    return %arg0, %arg1 : i32, i32
  }
}

</mosaic_0001>

<bundles_post_ra>
// kernel: tpu_custom_call.1
= control target key start
LH: loop header
LB: loop body
LE: loop exit
PB: predicated region body
PF: predicated region fallthrough
CT: control target
= control target key end

     0   :  { %7 = vsyncpa [#allocation3], 0  ;;  %s390_s0 = inlined_call_operand.vmem [shape: f32[32,1], index: 0, kind: input, shape index: {}]   ;;  %s391_s1 = inlined_call_operand.hbm [shape: f32[32,2048], index: 1, kind: input, shape index: {}]   ;;  %s392_s2 = inlined_call_operand.hbm [shape: f32[32,2048], index: 2, kind: output, shape index: {}]  }
   0x1   :  { %8 = vsyncpa [#allocation4], 0  ;;  %s310_s9 = smov [#allocation2]  }
   0x2   :  { %s16_s10 = sshll.u32 %s310_s9, 4  ;;  %s17_s10 = int_to_ptr.vmem [resolvable:$true] %s16_s10 }
   0x3   :  { %s274_s11 = scalar_lea.vmem %s17_s10, 8192  ;;  %p279_p1 = scmp.lt.s32.totalorder %s17_s10, %s17_s10 }
   0x4   :  { %p275_p0 = scmp.ne.s32.totalorder %s17_s10, %s274_s11  ;;  %p280_p2 = scmp.lt.s32.totalorder %s274_s11, %s274_s11 }
   0x6   :  { %p281_p3 = por %p280_p2, %p279_p1 }
   0x8   :  { %p282_p4 = pnand %p281_p3, %p275_p0 }
   0xa   :  { %285 = shalt.err (!%p282_p4)
}
   0xb   :  { %s311_s12 = smov 2048   ;;  %s312_s13 = smov 128  }
   0xc   :  { %22 = dma.hbm_to_vmem [thread:$0]  %s391_s1, 8192, %s17_s10, [#allocation3], %s311_s12, %s311_s12, %s312_s13  }
   0xd   :  { %306 = dma.done.wait [#allocation3], 8192  }
   0xe   :  { %307 = vsyncadd [#allocation3], 4294959104  ;;  %v313_v0 = vmov 0   ;;  %v92_v1 = vld [vmem:[%s390_s0 + $0x10] sm:$0xff]  ;;  %v90_v2 = vld [vmem:[%s390_s0] sm:$0xff] }
   0xf   :  { %265 = vset.pattern.permute.xlu1 %v313_v0  ;;  %264 = vset.pattern.permute.xlu0 %v313_v0  ;;  %v93_v3 = vld [vmem:[%s390_s0 + $0x18] sm:$0xff]  ;;  %v91_v4 = vld [vmem:[%s390_s0 + $0x8] sm:$0xff]  ;;  %v58_v5 = vld [vmem:[#allocation2 + $0x100] sm:$0xff]  ;;  %s314_s0 = smov [#allocation5]  }
  0x10   :  { %106 = vperm.xlu1 %265, %v92_v1   ;;  %96 = vperm.xlu0 %264, %v90_v2   ;;  %v59_v6 = vld [vmem:[#allocation2 + $0x108] sm:$0xff]  ;;  %v60_v7 = vld [vmem:[#allocation2 + $0x110] sm:$0xff]  ;;  %v61_v8 = vld [vmem:[#allocation2 + $0x118] sm:$0xff]  ;;  %s247_s23 = sshll.u32 %s314_s0, 4  ;;  %s248_s23 = int_to_ptr.vmem [resolvable:$true] %s247_s23 }
  0x11   :  { %v62_v9 = vld [vmem:[#allocation2 + $0x120] sm:$0xff]  ;;  %v63_v10 = vld [vmem:[#allocation2 + $0x128] sm:$0xff]  ;;  %v64_v11 = vld [vmem:[#allocation2 + $0x130] sm:$0xff]  ;;  %s286_s24 = scalar_lea.vmem %s248_s23, 8192  ;;  %p291_p6 = scmp.lt.s32.totalorder %s248_s23, %s248_s23 }
  0x12   :  { %v65_v12 = vld [vmem:[#allocation2 + $0x138] sm:$0xff]  ;;  %v66_v13 = vld [vmem:[#allocation2 + $0x140] sm:$0xff]  ;;  %v67_v14 = vld [vmem:[#allocation2 + $0x148] sm:$0xff]  ;;  %p287_p5 = scmp.ne.s32.totalorder %s248_s23, %s286_s24  ;;  %p292_p7 = scmp.lt.s32.totalorder %s286_s24, %s286_s24 }
  0x13   :  { %v68_v15 = vld [vmem:[#allocation2 + $0x150] sm:$0xff]  ;;  %v69_v16 = vld [vmem:[#allocation2 + $0x158] sm:$0xff]  ;;  %v70_v17 = vld [vmem:[#allocation2 + $0x160] sm:$0xff] }
  0x14   :  { %111 = vperm.xlu1 %265, %v93_v3   ;;  %101 = vperm.xlu0 %264, %v91_v4   ;;  %v71_v18 = vld [vmem:[#allocation2 + $0x168] sm:$0xff]  ;;  %v72_v19 = vld [vmem:[#allocation2 + $0x170] sm:$0xff]  ;;  %v73_v20 = vld [vmem:[#allocation2 + $0x178] sm:$0xff]  ;;  %p293_p8 = por %p292_p7, %p291_p6 }
  0x15   :  { %v26_v22 = vld [vmem:[#allocation2] sm:$0xff]  ;;  %v27_v23 = vld [vmem:[#allocation2 + $0x8] sm:$0xff]  ;;  %v28_v24 = vld [vmem:[#allocation2 + $0x10] sm:$0xff] }
  0x16   :  { %v29_v25 = vld [vmem:[#allocation2 + $0x18] sm:$0xff]  ;;  %v30_v30 = vld [vmem:[#allocation2 + $0x20] sm:$0xff]  ;;  %v31_v31 = vld [vmem:[#allocation2 + $0x28] sm:$0xff]  ;;  %p294_p9 = pnand %p293_p8, %p287_p5 }
  0x17   :  { %v32_v32 = vld [vmem:[#allocation2 + $0x30] sm:$0xff]  ;;  %v33_v33 = vld [vmem:[#allocation2 + $0x38] sm:$0xff]  ;;  %v34_v39 = vld [vmem:[#allocation2 + $0x40] sm:$0xff] }
  0x18   :  { %v35_v40 = vld [vmem:[#allocation2 + $0x48] sm:$0xff]  ;;  %v36_v41 = vld [vmem:[#allocation2 + $0x50] sm:$0xff]  ;;  %v37_v42 = vld [vmem:[#allocation2 + $0x58] sm:$0xff] }
  0x19   :  { %v38_v47 = vld [vmem:[#allocation2 + $0x60] sm:$0xff]  ;;  %v39_v48 = vld [vmem:[#allocation2 + $0x68] sm:$0xff]  ;;  %v40_v49 = vld [vmem:[#allocation2 + $0x70] sm:$0xff] }
  0x1a   :  { %v41_v50 = vld [vmem:[#allocation2 + $0x78] sm:$0xff]  ;;  %v74_v55 = vld [vmem:[#allocation2 + $0x180] sm:$0xff]  ;;  %v75_v56 = vld [vmem:[#allocation2 + $0x188] sm:$0xff] }
  0x1b   :  { %v76_v57 = vld [vmem:[#allocation2 + $0x190] sm:$0xff]  ;;  %v77_v58 = vld [vmem:[#allocation2 + $0x198] sm:$0xff]  ;;  %v78_v63 = vld [vmem:[#allocation2 + $0x1a0] sm:$0xff] }
  0x1c   :  { %v79_v0 = vld [vmem:[#allocation2 + $0x1a8] sm:$0xff]  ;;  %v80_v1 = vld [vmem:[#allocation2 + $0x1b0] sm:$0xff]  ;;  %v81_v2 = vld [vmem:[#allocation2 + $0x1b8] sm:$0xff] }
  0x8b   :  { %v107_v21 = vpop.permute.xlu1 %106  ;;  %v348_v38 = vpop.permute.xlu0 %96 }
  0x8c   :  { %v146_v26 = vmul.f32 %v107_v21, %v58_v5  ;;  %v147_v27 = vmul.f32 %v107_v21, %v59_v6  ;;  %v148_v28 = vmul.f32 %v107_v21, %v60_v7  ;;  %v149_v29 = vmul.f32 %v107_v21, %v61_v8  ;;  %v82_v8 = vld [vmem:[#allocation2 + $0x1c0] sm:$0xff] }
  0x8d   :  { %v150_v34 = vmul.f32 %v107_v21, %v62_v9  ;;  %v151_v35 = vmul.f32 %v107_v21, %v63_v10  ;;  %v152_v36 = vmul.f32 %v107_v21, %v64_v11  ;;  %v153_v37 = vmul.f32 %v107_v21, %v65_v12  ;;  %v83_v9 = vld [vmem:[#allocation2 + $0x1c8] sm:$0xff]  ;;  %v84_v10 = vld [vmem:[#allocation2 + $0x1d0] sm:$0xff] }
  0x8e   :  { %v154_v43 = vmul.f32 %v107_v21, %v66_v13  ;;  %v155_v44 = vmul.f32 %v107_v21, %v67_v14  ;;  %v156_v45 = vmul.f32 %v107_v21, %v68_v15  ;;  %v157_v46 = vmul.f32 %v107_v21, %v69_v16  ;;  %210 = vst [vmem:[#allocation5 + $0x100] sm:$0xff] %v146_v26  ;;  %v85_v15 = vld [vmem:[#allocation2 + $0x1d8] sm:$0xff]  ;;  %v86_v16 = vld [vmem:[#allocation2 + $0x1e0] sm:$0xff] }
  0x8f   :  { %211 = vst [vmem:[#allocation5 + $0x108] sm:$0xff] %v147_v27  ;;  %212 = vst [vmem:[#allocation5 + $0x110] sm:$0xff] %v148_v28  ;;  %v158_v51 = vmul.f32 %v107_v21, %v70_v17  ;;  %v159_v52 = vmul.f32 %v107_v21, %v71_v18  ;;  %v160_v53 = vmul.f32 %v107_v21, %v72_v19  ;;  %v358_v7 = vpop.permute.xlu1 %111  ;;  %v87_v17 = vld [vmem:[#allocation2 + $0x1e8] sm:$0xff] }
  0x90   :  { %213 = vst [vmem:[#allocation5 + $0x118] sm:$0xff] %v149_v29  ;;  %v161_v54 = vmul.f32 %v107_v21, %v73_v20  ;;  %214 = vst [vmem:[#allocation5 + $0x120] sm:$0xff] %v150_v34  ;;  %v114_v59 = vmul.f32 %v348_v38, %v26_v22  ;;  %v115_v60 = vmul.f32 %v348_v38, %v27_v23  ;;  %v88_v22 = vld [vmem:[#allocation2 + $0x1f0] sm:$0xff]  ;;  %v89_v23 = vld [vmem:[#allocation2 + $0x1f8] sm:$0xff] }
  0x91   :  { %215 = vst [vmem:[#allocation5 + $0x128] sm:$0xff] %v151_v35  ;;  %216 = vst [vmem:[#allocation5 + $0x130] sm:$0xff] %v152_v36  ;;  %v116_v61 = vmul.f32 %v348_v38, %v28_v24  ;;  %v117_v62 = vmul.f32 %v348_v38, %v29_v25  ;;  %v118_v3 = vmul.f32 %v348_v38, %v30_v30  ;;  %v42_v24 = vld [vmem:[#allocation2 + $0x80] sm:$0xff]  ;;  %v43_v29 = vld [vmem:[#allocation2 + $0x88] sm:$0xff]  ;;  %v102_v36 = vpop.permute.xlu0 %101 }
  0x92   :  { %217 = vst [vmem:[#allocation5 + $0x138] sm:$0xff] %v153_v37  ;;  %218 = vst [vmem:[#allocation5 + $0x140] sm:$0xff] %v154_v43  ;;  %v119_v4 = vmul.f32 %v348_v38, %v31_v31  ;;  %v120_v5 = vmul.f32 %v348_v38, %v32_v32  ;;  %v121_v6 = vmul.f32 %v348_v38, %v33_v33  ;;  %v44_v30 = vld [vmem:[#allocation2 + $0x90] sm:$0xff]  ;;  %v45_v31 = vld [vmem:[#allocation2 + $0x98] sm:$0xff] }
  0x93   :  { %219 = vst [vmem:[#allocation5 + $0x148] sm:$0xff] %v155_v44  ;;  %220 = vst [vmem:[#allocation5 + $0x150] sm:$0xff] %v156_v45  ;;  %v122_v11 = vmul.f32 %v348_v38, %v34_v39  ;;  %v123_v12 = vmul.f32 %v348_v38, %v35_v40  ;;  %v124_v13 = vmul.f32 %v348_v38, %v36_v41  ;;  %v46_v37 = vld [vmem:[#allocation2 + $0xa0] sm:$0xff]  ;;  %v48_v39 = vld [vmem:[#allocation2 + $0xb0] sm:$0xff] }
  0x94   :  { %221 = vst [vmem:[#allocation5 + $0x158] sm:$0xff] %v157_v46  ;;  %222 = vst [vmem:[#allocation5 + $0x160] sm:$0xff] %v158_v51  ;;  %v125_v14 = vmul.f32 %v348_v38, %v37_v42  ;;  %v126_v18 = vmul.f32 %v348_v38, %v38_v47  ;;  %v127_v19 = vmul.f32 %v348_v38, %v39_v48  ;;  %v49_v44 = vld [vmem:[#allocation2 + $0xb8] sm:$0xff]  ;;  %v50_v45 = vld [vmem:[#allocation2 + $0xc0] sm:$0xff] }
  0x95   :  { %223 = vst [vmem:[#allocation5 + $0x168] sm:$0xff] %v159_v52  ;;  %224 = vst [vmem:[#allocation5 + $0x170] sm:$0xff] %v160_v53  ;;  %v128_v20 = vmul.f32 %v348_v38, %v40_v49  ;;  %v129_v21 = vmul.f32 %v348_v38, %v41_v50  ;;  %v162_v25 = vmul.f32 %v358_v7, %v74_v55  ;;  %v47_v38 = vld [vmem:[#allocation2 + $0xa8] sm:$0xff]  ;;  %v52_v51 = vld [vmem:[#allocation2 + $0xd0] sm:$0xff] }
  0x96   :  { %225 = vst [vmem:[#allocation5 + $0x178] sm:$0xff] %v161_v54  ;;  %178 = vst [vmem:[#allocation5] sm:$0xff] %v114_v59  ;;  %v163_v26 = vmul.f32 %v358_v7, %v75_v56  ;;  %v164_v27 = vmul.f32 %v358_v7, %v76_v57  ;;  %v165_v28 = vmul.f32 %v358_v7, %v77_v58  ;;  %v51_v46 = vld [vmem:[#allocation2 + $0xc8] sm:$0xff]  ;;  %v53_v52 = vld [vmem:[#allocation2 + $0xd8] sm:$0xff] }
  0x97   :  { %179 = vst [vmem:[#allocation5 + $0x8] sm:$0xff] %v115_v60  ;;  %180 = vst [vmem:[#allocation5 + $0x10] sm:$0xff] %v116_v61  ;;  %v166_v32 = vmul.f32 %v358_v7, %v78_v63  ;;  %v167_v33 = vmul.f32 %v358_v7, %v79_v0  ;;  %v168_v34 = vmul.f32 %v358_v7, %v80_v1  ;;  %v54_v53 = vld [vmem:[#allocation2 + $0xe0] sm:$0xff]  ;;  %v55_v54 = vld [vmem:[#allocation2 + $0xe8] sm:$0xff] }
  0x98   :  { %181 = vst [vmem:[#allocation5 + $0x18] sm:$0xff] %v117_v62  ;;  %182 = vst [vmem:[#allocation5 + $0x20] sm:$0xff] %v118_v3  ;;  %v169_v35 = vmul.f32 %v358_v7, %v81_v2  ;;  %v170_v40 = vmul.f32 %v358_v7, %v82_v8  ;;  %v171_v41 = vmul.f32 %v358_v7, %v83_v9  ;;  %v56_v55 = vld [vmem:[#allocation2 + $0xf0] sm:$0xff]  ;;  %v57_v56 = vld [vmem:[#allocation2 + $0xf8] sm:$0xff] }
  0x99   :  { %183 = vst [vmem:[#allocation5 + $0x28] sm:$0xff] %v119_v4  ;;  %184 = vst [vmem:[#allocation5 + $0x30] sm:$0xff] %v120_v5  ;;  %v172_v42 = vmul.f32 %v358_v7, %v84_v10  ;;  %v173_v43 = vmul.f32 %v358_v7, %v85_v15  ;;  %v174_v47 = vmul.f32 %v358_v7, %v86_v16 }
  0x9a   :  { %185 = vst [vmem:[#allocation5 + $0x38] sm:$0xff] %v121_v6  ;;  %186 = vst [vmem:[#allocation5 + $0x40] sm:$0xff] %v122_v11  ;;  %v175_v48 = vmul.f32 %v358_v7, %v87_v17  ;;  %v176_v49 = vmul.f32 %v358_v7, %v88_v22  ;;  %v177_v50 = vmul.f32 %v358_v7, %v89_v23 }
  0x9b   :  { %187 = vst [vmem:[#allocation5 + $0x48] sm:$0xff] %v123_v12  ;;  %188 = vst [vmem:[#allocation5 + $0x50] sm:$0xff] %v124_v13  ;;  %v130_v57 = vmul.f32 %v102_v36, %v42_v24  ;;  %v131_v58 = vmul.f32 %v102_v36, %v43_v29  ;;  %v132_v59 = vmul.f32 %v102_v36, %v44_v30 }
  0x9c   :  { %189 = vst [vmem:[#allocation5 + $0x58] sm:$0xff] %v125_v14  ;;  %190 = vst [vmem:[#allocation5 + $0x60] sm:$0xff] %v126_v18  ;;  %v133_v60 = vmul.f32 %v102_v36, %v45_v31  ;;  %v134_v61 = vmul.f32 %v102_v36, %v46_v37  ;;  %v135_v62 = vmul.f32 %v102_v36, %v47_v38 }
  0x9d   :  { %191 = vst [vmem:[#allocation5 + $0x68] sm:$0xff] %v127_v19  ;;  %192 = vst [vmem:[#allocation5 + $0x70] sm:$0xff] %v128_v20  ;;  %v136_v63 = vmul.f32 %v102_v36, %v48_v39  ;;  %v137_v0 = vmul.f32 %v102_v36, %v49_v44  ;;  %v138_v1 = vmul.f32 %v102_v36, %v50_v45 }
  0x9e   :  { %193 = vst [vmem:[#allocation5 + $0x78] sm:$0xff] %v129_v21  ;;  %226 = vst [vmem:[#allocation5 + $0x180] sm:$0xff] %v162_v25  ;;  %v139_v2 = vmul.f32 %v102_v36, %v51_v46  ;;  %v140_v3 = vmul.f32 %v102_v36, %v52_v51  ;;  %v141_v4 = vmul.f32 %v102_v36, %v53_v52 }
  0x9f   :  { %227 = vst [vmem:[#allocation5 + $0x188] sm:$0xff] %v163_v26  ;;  %228 = vst [vmem:[#allocation5 + $0x190] sm:$0xff] %v164_v27  ;;  %v142_v5 = vmul.f32 %v102_v36, %v54_v53  ;;  %v143_v6 = vmul.f32 %v102_v36, %v55_v54  ;;  %v144_v7 = vmul.f32 %v102_v36, %v56_v55 }
  0xa0   :  { %229 = vst [vmem:[#allocation5 + $0x198] sm:$0xff] %v165_v28  ;;  %230 = vst [vmem:[#allocation5 + $0x1a0] sm:$0xff] %v166_v32  ;;  %v145_v8 = vmul.f32 %v102_v36, %v57_v56 }
  0xa1   :  { %231 = vst [vmem:[#allocation5 + $0x1a8] sm:$0xff] %v167_v33  ;;  %232 = vst [vmem:[#allocation5 + $0x1b0] sm:$0xff] %v168_v34 }
  0xa2   :  { %233 = vst [vmem:[#allocation5 + $0x1b8] sm:$0xff] %v169_v35  ;;  %234 = vst [vmem:[#allocation5 + $0x1c0] sm:$0xff] %v170_v40 }
  0xa3   :  { %235 = vst [vmem:[#allocation5 + $0x1c8] sm:$0xff] %v171_v41  ;;  %236 = vst [vmem:[#allocation5 + $0x1d0] sm:$0xff] %v172_v42 }
  0xa4   :  { %237 = vst [vmem:[#allocation5 + $0x1d8] sm:$0xff] %v173_v43  ;;  %238 = vst [vmem:[#allocation5 + $0x1e0] sm:$0xff] %v174_v47 }
  0xa5   :  { %239 = vst [vmem:[#allocation5 + $0x1e8] sm:$0xff] %v175_v48  ;;  %240 = vst [vmem:[#allocation5 + $0x1f0] sm:$0xff] %v176_v49 }
  0xa6   :  { %241 = vst [vmem:[#allocation5 + $0x1f8] sm:$0xff] %v177_v50  ;;  %194 = vst [vmem:[#allocation5 + $0x80] sm:$0xff] %v130_v57 }
  0xa7   :  { %195 = vst [vmem:[#allocation5 + $0x88] sm:$0xff] %v131_v58  ;;  %196 = vst [vmem:[#allocation5 + $0x90] sm:$0xff] %v132_v59 }
  0xa8   :  { %197 = vst [vmem:[#allocation5 + $0x98] sm:$0xff] %v133_v60  ;;  %198 = vst [vmem:[#allocation5 + $0xa0] sm:$0xff] %v134_v61 }
  0xa9   :  { %199 = vst [vmem:[#allocation5 + $0xa8] sm:$0xff] %v135_v62  ;;  %200 = vst [vmem:[#allocation5 + $0xb0] sm:$0xff] %v136_v63 }
  0xaa   :  { %201 = vst [vmem:[#allocation5 + $0xb8] sm:$0xff] %v137_v0  ;;  %202 = vst [vmem:[#allocation5 + $0xc0] sm:$0xff] %v138_v1 }
  0xab   :  { %203 = vst [vmem:[#allocation5 + $0xc8] sm:$0xff] %v139_v2  ;;  %204 = vst [vmem:[#allocation5 + $0xd0] sm:$0xff] %v140_v3 }
  0xac   :  { %205 = vst [vmem:[#allocation5 + $0xd8] sm:$0xff] %v141_v4  ;;  %206 = vst [vmem:[#allocation5 + $0xe0] sm:$0xff] %v142_v5 }
  0xad   :  { %207 = vst [vmem:[#allocation5 + $0xe8] sm:$0xff] %v143_v6  ;;  %208 = vst [vmem:[#allocation5 + $0xf0] sm:$0xff] %v144_v7 }
  0xae   :  { %209 = vst [vmem:[#allocation5 + $0xf8] sm:$0xff] %v145_v8 }
  0xaf   :  { %297 = shalt.err (!%p294_p9)
}
  0xb0   :  { %253 = dma.vmem_to_hbm [thread:$0]  %s248_s23, 8192, %s392_s2, [#allocation4], %s311_s12, %s311_s12, %s312_s13  }
  0xb1   :  { %308 = dma.done.wait [#allocation4], 8192  }
  0xb2   :  { %309 = vsyncadd [#allocation4], 4294959104 }
  0xb3   :  { %257 = vsyncpa [#allocation3], 1 }
  0xb4   :  { %258 = vsyncpa [#allocation4], 1 }

</bundles_post_ra>
